<compile_context>
chip_gen: v6e
topology: v6e:2x2x1
jax: 0.10.0
libtpu: 0.0.40
codegen_flags: <defaults>
</compile_context>

<pallas_src>
import functools

import jax
import jax.numpy as jnp
from jax.experimental import pallas as pl
from jax.experimental.pallas import tpu as pltpu


_TB_CAP = 2048  # rows per batch tile; large tiles amortize per-grid-step overhead.


def _round_up(x, m):
    return ((x + m - 1) // m) * m


def _sigmoid_fast(h):
    # Mathematically identical to 1/(1+exp(-h)); a single EUP tanh per element.
    return 0.5 * (jnp.tanh(0.5 * h) + 1.0)


def _mlp_kernel(x_ref, w1_ref, b1_ref, w2_ref, b2_ref, w3_ref, b3_ref, o_ref):
    """Fused forward for one (tb, d0) batch tile: 3 MXU matmuls + 2 sigmoids."""
    # Cast to the weight dtype (bf16) *inside* the kernel: HBM only ever carries
    # the original f32 x (no separate cast op / extra HBM round trip).
    x = x_ref[...].astype(w1_ref.dtype)

    h1 = jnp.dot(x, w1_ref[...], preferred_element_type=jnp.float32) + b1_ref[...]
    h1 = _sigmoid_fast(h1).astype(w2_ref.dtype)      # back to bf16 for the MXU

    h2 = jnp.dot(h1, w2_ref[...], preferred_element_type=jnp.float32) + b2_ref[...]
    h2 = _sigmoid_fast(h2).astype(w3_ref.dtype)

    y = jnp.dot(h2, w3_ref[...], preferred_element_type=jnp.float32) + b3_ref[...]
    # If the output block is a lane-dense (tb*out_dim/128, 128) slab, this
    # reshape re-lays the short rows into full 128-lane vectors -> unmasked
    # stores / long HBM lines.  Otherwise it is an identity reshape.
    o_ref[...] = y.reshape(o_ref.shape).astype(o_ref.dtype)


def _pick_tile(batch, out_dim, cap=_TB_CAP):
    """Choose the batch tile.

    * multiple of 8 (f32 sublane tile)
    * as large as the cap allows (amortizes ~0.35us/grid-step + long DMA lines)
    * >= 2 tiles whenever the batch allows it, so v7x's two TensorCores both
      get work under dimension_semantics=("parallel",)
    * aligned so the lane-dense output slab (see _forward) stays legal
    """
    if 0 < out_dim < 128 and 128 % out_dim == 0:
        pack = 128 // out_dim            # y-rows packed per 128-lane output row
    else:
        pack = 1
    single_align = max(8, pack)          # single-tile slab: tb*out_dim % 128 == 0
    multi_align = max(8, 8 * pack)       # multi-tile slab: packed block rows % 8 == 0
    cap = _round_up(cap, multi_align)
    if batch <= multi_align:
        return _round_up(batch, single_align)              # one small tile
    return min(cap, _round_up(pl.cdiv(batch, 2), multi_align))


@functools.partial(jax.jit, static_argnames=("tb", "weight_buffers", "allow_slab"))
def _forward(x, params, *, tb, weight_buffers, allow_slab):
    w1, b1 = params["w1"], params["b1"]
    w2, b2 = params["w2"], params["b2"]
    w3, b3 = params["w3"], params["b3"]

    batch, d0 = x.shape
    d1, d2 = w1.shape[1], w2.shape[1]
    out_dim = w3.shape[1]
    num_tiles = pl.cdiv(batch, tb)

    # ---- output layout ------------------------------------------------------
    # out_dim (e.g. 8) is far below the 128-lane vreg width, so a plain
    # (tb, out_dim) tile stores via masked vst + short HBM lines.  When the
    # alignment works out, emit a lane-dense (rows, 128) f32 slab instead and
    # un-pack it with a free row-major reshape in the wrapper.
    pack = 128 // out_dim if (0 < out_dim < 128 and 128 % out_dim == 0) else 1
    use_slab = (
        allow_slab
        and pack > 1
        and tb % pack == 0
        and (num_tiles == 1 or (tb // pack) % 8 == 0)
    )
    if use_slab:
        block_rows = tb // pack
        out_shape = jax.ShapeDtypeStruct((num_tiles * block_rows, 128), jnp.float32)
        out_spec = pl.BlockSpec((block_rows, 128), lambda i: (i, 0))
        out_tile_bytes = block_rows * 128 * 4
    else:
        # Grid may overhang the batch; Pallas clips the partial last write.
        out_shape = jax.ShapeDtypeStruct((batch, out_dim), jnp.float32)
        out_spec = pl.BlockSpec((tb, out_dim), lambda i: (i, 0))
        out_tile_bytes = tb * out_dim * 4

    # ---- weights / biases stay VMEM-resident --------------------------------
    def resident(arr):
        if weight_buffers is None:
            return pl.BlockSpec(arr.shape, lambda i: (0, 0))
        # Constant index_map -> fetched once; Buffered(1) drops the useless
        # second buffer (halves resident-weight VMEM for non-toy hidden dims).
        return pl.BlockSpec(arr.shape, lambda i: (0, 0),
                            pipeline_mode=pl.Buffered(weight_buffers))

    # ---- explicit VMEM budget (derived, not guessed) -------------------------
    w_bufs = 1 if weight_buffers == 1 else 2
    weight_bytes = sum(int(a.size) * a.dtype.itemsize for a in (w1, b1, w2, b2, w3, b3))
    x_tile_bytes = tb * d0 * x.dtype.itemsize
    interm_bytes = tb * (d1 + d2 + out_dim) * 4 * 2       # h1/h2/y f32 (+ narrow copies)
    vmem_est = w_bufs * weight_bytes + 2 * x_tile_bytes + 2 * out_tile_bytes + interm_bytes
    # Floor 32 MiB (covers every generation's scoped default we rely on), cap
    # 64 MiB so the request stays inside v7x's physical VMEM.
    vmem_limit = int(min(64 << 20, max(32 << 20, 2 * vmem_est)))

    out = pl.pallas_call(
        _mlp_kernel,
        out_shape=out_shape,
        grid=(num_tiles,),
        in_specs=[
            pl.BlockSpec((tb, d0), lambda i: (i, 0)),     # x: batch-tiled, f32 from HBM
            resident(w1), resident(b1),
            resident(w2), resident(b2),
            resident(w3), resident(b3),
        ],
        out_specs=out_spec,
        compiler_params=pltpu.CompilerParams(
            dimension_semantics=("parallel",),             # megacore sharding on v7x
            vmem_limit_bytes=vmem_limit,
        ),
    )(x, w1, b1, w2, b2, w3, b3)

    if use_slab:
        out = out.reshape(num_tiles * tb, out_dim)[:batch]
    return out


# First (weight_buffers, allow_slab) config that compiled cleanly on this JAX/
# libtpu; tried first on later calls.  Fallbacks only exist for compatibility
# with Pallas versions lacking pl.Buffered / the lane-dense reshape lowering.
_CONFIG_ORDER = ((1, True), (None, True), (1, False), (None, False))
_config_cache = None


def fully_connected_nn(x, params, *, tb=None):
    """Forward pass of FullyConnectedNN via a single fused, batch-tiled Pallas kernel.

    x: (B, dims[0]) float32
    params: dict with w1 (d0,d1), b1 (1,d1), w2 (d1,d2), b2 (1,d2),
            w3 (d2,d_out), b3 (1,d_out) -- weights stored as (in, out).
    """
    global _config_cache
    batch = x.shape[0]
    out_dim = params["w3"].shape[1]
    if tb is None:
        tb = _pick_tile(batch, out_dim)
    tb = max(8, _round_up(int(tb), 8))

    order = list(_CONFIG_ORDER)
    if _config_cache in order:
        order.remove(_config_cache)
        order.insert(0, _config_cache)

    last_err = None
    for weight_buffers, allow_slab in order:
        try:
            out = _forward(x, params, tb=tb,
                           weight_buffers=weight_buffers, allow_slab=allow_slab)
            _config_cache = (weight_buffers, allow_slab)
            return out
        except Exception as err:  # noqa: BLE001 - compatibility fallback only
            last_err = err
    raise last_err


def init_params(key, dims):
    """Deterministic init mimicking nn.Linear default (U[-1/sqrt(fan_in), +1/sqrt(fan_in)]).

    dims = [in1, out1, in2, out2, in3, out3]; weights stored as (in, out).
    """
    keys = jax.random.split(key, 6)
    params = {}
    layer_dims = [(dims[0], dims[1]), (dims[2], dims[3]), (dims[4], dims[5])]
    for i, (fan_in, fan_out) in enumerate(layer_dims, start=1):
        bound = 1.0 / jnp.sqrt(jnp.float32(fan_in))
        w = jax.random.uniform(keys[2 * (i - 1)], (fan_in, fan_out), jnp.float32, -bound, bound)
        b = jax.random.uniform(keys[2 * (i - 1) + 1], (1, fan_out), jnp.float32, -bound, bound)
        params[f"w{i}"] = w
        params[f"b{i}"] = b
    return params


def prepare_params(params, use_bf16=True):
    """Cast weights to bf16 once, outside the jitted forward (biases stay f32).

    Pass use_bf16=False for a pure-f32 path (bit-closer parity with PyTorch).
    """
    if not use_bf16:
        return dict(params)
    out = dict(params)
    for k in ("w1", "w2", "w3"):
        out[k] = params[k].astype(jnp.bfloat16)
    return out


def reference_forward(x, params, dtype=jnp.float32):
    """Pure-JAX reference. dtype controls the matmul-input precision."""
    w1 = params["w1"].astype(dtype)
    w2 = params["w2"].astype(dtype)
    w3 = params["w3"].astype(dtype)
    h1 = jax.nn.sigmoid(
        jnp.dot(x.astype(dtype), w1, preferred_element_type=jnp.float32) + params["b1"])
    h2 = jax.nn.sigmoid(
        jnp.dot(h1.astype(dtype), w2, preferred_element_type=jnp.float32) + params["b2"])
    return jnp.dot(h2.astype(dtype), w3, preferred_element_type=jnp.float32) + params["b3"]


if __name__ == "__main__":
    # Small shapes consistent with the module: dims[1] == dims[2], dims[3] == dims[4].
    dims = [16, 32, 32, 32, 32, 8]

    key = jax.random.PRNGKey(0)
    k_x1, k_x2, k_p = jax.random.split(key, 3)
    params_f32 = init_params(k_p, dims)
    params = prepare_params(params_f32)          # bf16 weights cast once, outside the forward

    x_small = jax.random.normal(k_x1, (30, dims[0]), jnp.float32)   # B not a multiple of the tile
    x_big = jax.random.normal(k_x2, (300, dims[0]), jnp.float32)

    cases = [
        (x_small, None),   # auto tile: single lane-dense slab tile
        (x_small, 16),     # explicit tiny tile: multi-step grid + clipped partial last block
        (x_big, 128),      # multi-tile lane-dense slab with an OOB-read partial last x tile
    ]
    for x, tb in cases:
        y = jax.block_until_ready(fully_connected_nn(x, params, tb=tb))
        assert y.shape == (x.shape[0], dims[5])
        # Tight check vs a bf16-matmul-input reference (same precision regime).
        y_ref_bf16 = reference_forward(x, params_f32, dtype=jnp.bfloat16)
        assert jnp.allclose(y, y_ref_bf16, atol=2e-3, rtol=2e-3), "mismatch vs bf16 reference"
        # Loose check vs the full-f32 reference (bf16 MXU inputs => ~1e-3..1e-2 err).
        y_ref_f32 = reference_forward(x, params_f32, dtype=jnp.float32)
        assert jnp.allclose(y, y_ref_f32, atol=5e-2, rtol=5e-2), "mismatch vs f32 reference"

    print("KERNEL_OK")
</pallas_src>

<mosaic_0001>
module attributes {stable_mosaic.version = 11 : i64} {
  func.func @_mlp_kernel(%arg0: i32, %arg1: memref<32x16xf32, #tpu.memory_space<vmem>>, %arg2: memref<16x32xbf16, #tpu.memory_space<vmem>>, %arg3: memref<1x32xf32, #tpu.memory_space<vmem>>, %arg4: memref<32x32xbf16, #tpu.memory_space<vmem>>, %arg5: memref<1x32xf32, #tpu.memory_space<vmem>>, %arg6: memref<32x8xbf16, #tpu.memory_space<vmem>>, %arg7: memref<1x8xf32, #tpu.memory_space<vmem>>, %arg8: memref<2x128xf32, #tpu.memory_space<vmem>>) attributes {dimension_semantics = [#tpu.dimension_semantics<parallel>], iteration_bounds = array<i64: 1>, scalar_prefetch = 0 : i64, scratch_operands = 0 : i64, tpu.core_type = #tpu.core_type<tc>, window_params = [{transform_indices = @transform_0, window_bounds = array<i64: 32, 16>}, {pipeline_mode = #tpu.pipeline_mode<synchronous>, transform_indices = @transform_1, window_bounds = array<i64: 16, 32>}, {pipeline_mode = #tpu.pipeline_mode<synchronous>, transform_indices = @transform_2, window_bounds = array<i64: 1, 32>}, {pipeline_mode = #tpu.pipeline_mode<synchronous>, transform_indices = @transform_3, window_bounds = array<i64: 32, 32>}, {pipeline_mode = #tpu.pipeline_mode<synchronous>, transform_indices = @transform_4, window_bounds = array<i64: 1, 32>}, {pipeline_mode = #tpu.pipeline_mode<synchronous>, transform_indices = @transform_5, window_bounds = array<i64: 32, 8>}, {pipeline_mode = #tpu.pipeline_mode<synchronous>, transform_indices = @transform_6, window_bounds = array<i64: 1, 8>}, {transform_indices = @transform_7, window_bounds = array<i64: 2, 128>}]} {
    %c0 = arith.constant 0 : index
    %c0_0 = arith.constant 0 : index
    %0 = vector.load %arg1[%c0, %c0_0] : memref<32x16xf32, #tpu.memory_space<vmem>>, vector<32x16xf32>
    %1 = arith.truncf %0 : vector<32x16xf32> to vector<32x16xbf16>
    %c0_1 = arith.constant 0 : index
    %c0_2 = arith.constant 0 : index
    %2 = vector.load %arg2[%c0_1, %c0_2] : memref<16x32xbf16, #tpu.memory_space<vmem>>, vector<16x32xbf16>
    %cst = arith.constant dense<0.000000e+00> : vector<32x32xf32>
    %3 = tpu.matmul %1, %2, %cst {dimension_numbers = #tpu.dot_dimension_numbers<[1], [0], [0], [1], [0, 0, 1, 1], [], []>} : vector<32x16xbf16>, vector<16x32xbf16>, vector<32x32xf32> -> vector<32x32xf32>
    %c0_3 = arith.constant 0 : index
    %c0_4 = arith.constant 0 : index
    %4 = vector.load %arg3[%c0_3, %c0_4] : memref<1x32xf32, #tpu.memory_space<vmem>>, vector<1x32xf32>
    %5 = vector.broadcast %4 : vector<1x32xf32> to vector<32x32xf32>
    %6 = arith.addf %3, %5 : vector<32x32xf32>
    %cst_5 = arith.constant 5.000000e-01 : f32
    %7 = vector.broadcast %cst_5 : f32 to vector<32x32xf32>
    %8 = arith.mulf %7, %6 : vector<32x32xf32>
    %9 = math.tanh %8 : vector<32x32xf32>
    %cst_6 = arith.constant 1.000000e+00 : f32
    %10 = vector.broadcast %cst_6 : f32 to vector<32x32xf32>
    %11 = arith.addf %9, %10 : vector<32x32xf32>
    %cst_7 = arith.constant 5.000000e-01 : f32
    %12 = vector.broadcast %cst_7 : f32 to vector<32x32xf32>
    %13 = arith.mulf %12, %11 : vector<32x32xf32>
    %14 = arith.truncf %13 : vector<32x32xf32> to vector<32x32xbf16>
    %c0_8 = arith.constant 0 : index
    %c0_9 = arith.constant 0 : index
    %15 = vector.load %arg4[%c0_8, %c0_9] : memref<32x32xbf16, #tpu.memory_space<vmem>>, vector<32x32xbf16>
    %cst_10 = arith.constant dense<0.000000e+00> : vector<32x32xf32>
    %16 = tpu.matmul %14, %15, %cst_10 {dimension_numbers = #tpu.dot_dimension_numbers<[1], [0], [0], [1], [0, 0, 1, 1], [], []>} : vector<32x32xbf16>, vector<32x32xbf16>, vector<32x32xf32> -> vector<32x32xf32>
    %c0_11 = arith.constant 0 : index
    %c0_12 = arith.constant 0 : index
    %17 = vector.load %arg5[%c0_11, %c0_12] : memref<1x32xf32, #tpu.memory_space<vmem>>, vector<1x32xf32>
    %18 = vector.broadcast %17 : vector<1x32xf32> to vector<32x32xf32>
    %19 = arith.addf %16, %18 : vector<32x32xf32>
    %cst_13 = arith.constant 5.000000e-01 : f32
    %20 = vector.broadcast %cst_13 : f32 to vector<32x32xf32>
    %21 = arith.mulf %20, %19 : vector<32x32xf32>
    %22 = math.tanh %21 : vector<32x32xf32>
    %cst_14 = arith.constant 1.000000e+00 : f32
    %23 = vector.broadcast %cst_14 : f32 to vector<32x32xf32>
    %24 = arith.addf %22, %23 : vector<32x32xf32>
    %cst_15 = arith.constant 5.000000e-01 : f32
    %25 = vector.broadcast %cst_15 : f32 to vector<32x32xf32>
    %26 = arith.mulf %25, %24 : vector<32x32xf32>
    %27 = arith.truncf %26 : vector<32x32xf32> to vector<32x32xbf16>
    %c0_16 = arith.constant 0 : index
    %c0_17 = arith.constant 0 : index
    %28 = vector.load %arg6[%c0_16, %c0_17] : memref<32x8xbf16, #tpu.memory_space<vmem>>, vector<32x8xbf16>
    %cst_18 = arith.constant dense<0.000000e+00> : vector<32x8xf32>
    %29 = tpu.matmul %27, %28, %cst_18 {dimension_numbers = #tpu.dot_dimension_numbers<[1], [0], [0], [1], [0, 0, 1, 1], [], []>} : vector<32x32xbf16>, vector<32x8xbf16>, vector<32x8xf32> -> vector<32x8xf32>
    %c0_19 = arith.constant 0 : index
    %c0_20 = arith.constant 0 : index
    %30 = vector.load %arg7[%c0_19, %c0_20] : memref<1x8xf32, #tpu.memory_space<vmem>>, vector<1x8xf32>
    %31 = vector.broadcast %30 : vector<1x8xf32> to vector<32x8xf32>
    %32 = arith.addf %29, %31 : vector<32x8xf32>
    %33 = vector.shape_cast %32 : vector<32x8xf32> to vector<2x128xf32>
    %c0_21 = arith.constant 0 : index
    %c0_22 = arith.constant 0 : index
    %34 = vector.load %arg8[%c0_21, %c0_22] : memref<2x128xf32, #tpu.memory_space<vmem>>, vector<2x128xf32>
    tpu.vector_store %arg8[%c0_21, %c0_22], %33 {strides = array<i32>} : memref<2x128xf32, #tpu.memory_space<vmem>>, vector<2x128xf32>,
    return
  }
  func.func @transform_0(%arg0: i32) -> (i32, i32) {
    %c0_i32 = arith.constant 0 : i32
    %c0_i32_0 = arith.constant 0 : i32
    return %arg0, %c0_i32 : i32, i32
  }
  func.func @transform_1(%arg0: i32) -> (i32, i32) {
    %c0_i32 = arith.constant 0 : i32
    %c0_i32_0 = arith.constant 0 : i32
    %c0_i32_1 = arith.constant 0 : i32
    return %c0_i32, %c0_i32_0 : i32, i32
  }
  func.func @transform_2(%arg0: i32) -> (i32, i32) {
    %c0_i32 = arith.constant 0 : i32
    %c0_i32_0 = arith.constant 0 : i32
    %c0_i32_1 = arith.constant 0 : i32
    return %c0_i32, %c0_i32_0 : i32, i32
  }
  func.func @transform_3(%arg0: i32) -> (i32, i32) {
    %c0_i32 = arith.constant 0 : i32
    %c0_i32_0 = arith.constant 0 : i32
    %c0_i32_1 = arith.constant 0 : i32
    return %c0_i32, %c0_i32_0 : i32, i32
  }
  func.func @transform_4(%arg0: i32) -> (i32, i32) {
    %c0_i32 = arith.constant 0 : i32
    %c0_i32_0 = arith.constant 0 : i32
    %c0_i32_1 = arith.constant 0 : i32
    return %c0_i32, %c0_i32_0 : i32, i32
  }
  func.func @transform_5(%arg0: i32) -> (i32, i32) {
    %c0_i32 = arith.constant 0 : i32
    %c0_i32_0 = arith.constant 0 : i32
    %c0_i32_1 = arith.constant 0 : i32
    return %c0_i32, %c0_i32_0 : i32, i32
  }
  func.func @transform_6(%arg0: i32) -> (i32, i32) {
    %c0_i32 = arith.constant 0 : i32
    %c0_i32_0 = arith.constant 0 : i32
    %c0_i32_1 = arith.constant 0 : i32
    return %c0_i32, %c0_i32_0 : i32, i32
  }
  func.func @transform_7(%arg0: i32) -> (i32, i32) {
    %c0_i32 = arith.constant 0 : i32
    %c0_i32_0 = arith.constant 0 : i32
    return %arg0, %c0_i32 : i32, i32
  }
}

module attributes {stable_mosaic.version = 11 : i64} {
  func.func @_mlp_kernel(%arg0: i32, %arg1: memref<32x16xf32, #tpu.memory_space<vmem>>, %arg2: memref<16x32xbf16, #tpu.memory_space<vmem>>, %arg3: memref<1x32xf32, #tpu.memory_space<vmem>>, %arg4: memref<32x32xbf16, #tpu.memory_space<vmem>>, %arg5: memref<1x32xf32, #tpu.memory_space<vmem>>, %arg6: memref<32x8xbf16, #tpu.memory_space<vmem>>, %arg7: memref<1x8xf32, #tpu.memory_space<vmem>>, %arg8: memref<2x128xf32, #tpu.memory_space<vmem>>) attributes {dimension_semantics = [#tpu.dimension_semantics<parallel>], iteration_bounds = array<i64: 1>, scalar_prefetch = 0 : i64, scratch_operands = 0 : i64, tpu.core_type = #tpu.core_type<tc>, window_params = [{transform_indices = @transform_0, window_bounds = array<i64: 32, 16>}, {pipeline_mode = #tpu.pipeline_mode<synchronous>, transform_indices = @transform_1, window_bounds = array<i64: 16, 32>}, {pipeline_mode = #tpu.pipeline_mode<synchronous>, transform_indices = @transform_2, window_bounds = array<i64: 1, 32>}, {pipeline_mode = #tpu.pipeline_mode<synchronous>, transform_indices = @transform_3, window_bounds = array<i64: 32, 32>}, {pipeline_mode = #tpu.pipeline_mode<synchronous>, transform_indices = @transform_4, window_bounds = array<i64: 1, 32>}, {pipeline_mode = #tpu.pipeline_mode<synchronous>, transform_indices = @transform_5, window_bounds = array<i64: 32, 8>}, {pipeline_mode = #tpu.pipeline_mode<synchronous>, transform_indices = @transform_6, window_bounds = array<i64: 1, 8>}, {transform_indices = @transform_7, window_bounds = array<i64: 2, 128>}]} {
    %c0 = arith.constant 0 : index
    %c0_0 = arith.constant 0 : index
    %0 = vector.load %arg1[%c0, %c0_0] : memref<32x16xf32, #tpu.memory_space<vmem>>, vector<32x16xf32>
    %1 = arith.truncf %0 : vector<32x16xf32> to vector<32x16xbf16>
    %c0_1 = arith.constant 0 : index
    %c0_2 = arith.constant 0 : index
    %2 = vector.load %arg2[%c0_1, %c0_2] : memref<16x32xbf16, #tpu.memory_space<vmem>>, vector<16x32xbf16>
    %cst = arith.constant dense<0.000000e+00> : vector<32x32xf32>
    %3 = tpu.matmul %1, %2, %cst {dimension_numbers = #tpu.dot_dimension_numbers<[1], [0], [0], [1], [0, 0, 1, 1], [], []>} : vector<32x16xbf16>, vector<16x32xbf16>, vector<32x32xf32> -> vector<32x32xf32>
    %c0_3 = arith.constant 0 : index
    %c0_4 = arith.constant 0 : index
    %4 = vector.load %arg3[%c0_3, %c0_4] : memref<1x32xf32, #tpu.memory_space<vmem>>, vector<1x32xf32>
    %5 = vector.broadcast %4 : vector<1x32xf32> to vector<32x32xf32>
    %6 = arith.addf %3, %5 : vector<32x32xf32>
    %cst_5 = arith.constant 5.000000e-01 : f32
    %7 = vector.broadcast %cst_5 : f32 to vector<32x32xf32>
    %8 = arith.mulf %7, %6 : vector<32x32xf32>
    %9 = math.tanh %8 : vector<32x32xf32>
    %cst_6 = arith.constant 1.000000e+00 : f32
    %10 = vector.broadcast %cst_6 : f32 to vector<32x32xf32>
    %11 = arith.addf %9, %10 : vector<32x32xf32>
    %cst_7 = arith.constant 5.000000e-01 : f32
    %12 = vector.broadcast %cst_7 : f32 to vector<32x32xf32>
    %13 = arith.mulf %12, %11 : vector<32x32xf32>
    %14 = arith.truncf %13 : vector<32x32xf32> to vector<32x32xbf16>
    %c0_8 = arith.constant 0 : index
    %c0_9 = arith.constant 0 : index
    %15 = vector.load %arg4[%c0_8, %c0_9] : memref<32x32xbf16, #tpu.memory_space<vmem>>, vector<32x32xbf16>
    %cst_10 = arith.constant dense<0.000000e+00> : vector<32x32xf32>
    %16 = tpu.matmul %14, %15, %cst_10 {dimension_numbers = #tpu.dot_dimension_numbers<[1], [0], [0], [1], [0, 0, 1, 1], [], []>} : vector<32x32xbf16>, vector<32x32xbf16>, vector<32x32xf32> -> vector<32x32xf32>
    %c0_11 = arith.constant 0 : index
    %c0_12 = arith.constant 0 : index
    %17 = vector.load %arg5[%c0_11, %c0_12] : memref<1x32xf32, #tpu.memory_space<vmem>>, vector<1x32xf32>
    %18 = vector.broadcast %17 : vector<1x32xf32> to vector<32x32xf32>
    %19 = arith.addf %16, %18 : vector<32x32xf32>
    %cst_13 = arith.constant 5.000000e-01 : f32
    %20 = vector.broadcast %cst_13 : f32 to vector<32x32xf32>
    %21 = arith.mulf %20, %19 : vector<32x32xf32>
    %22 = math.tanh %21 : vector<32x32xf32>
    %cst_14 = arith.constant 1.000000e+00 : f32
    %23 = vector.broadcast %cst_14 : f32 to vector<32x32xf32>
    %24 = arith.addf %22, %23 : vector<32x32xf32>
    %cst_15 = arith.constant 5.000000e-01 : f32
    %25 = vector.broadcast %cst_15 : f32 to vector<32x32xf32>
    %26 = arith.mulf %25, %24 : vector<32x32xf32>
    %27 = arith.truncf %26 : vector<32x32xf32> to vector<32x32xbf16>
    %c0_16 = arith.constant 0 : index
    %c0_17 = arith.constant 0 : index
    %28 = vector.load %arg6[%c0_16, %c0_17] : memref<32x8xbf16, #tpu.memory_space<vmem>>, vector<32x8xbf16>
    %cst_18 = arith.constant dense<0.000000e+00> : vector<32x8xf32>
    %29 = tpu.matmul %27, %28, %cst_18 {dimension_numbers = #tpu.dot_dimension_numbers<[1], [0], [0], [1], [0, 0, 1, 1], [], []>} : vector<32x32xbf16>, vector<32x8xbf16>, vector<32x8xf32> -> vector<32x8xf32>
    %c0_19 = arith.constant 0 : index
    %c0_20 = arith.constant 0 : index
    %30 = vector.load %arg7[%c0_19, %c0_20] : memref<1x8xf32, #tpu.memory_space<vmem>>, vector<1x8xf32>
    %31 = vector.broadcast %30 : vector<1x8xf32> to vector<32x8xf32>
    %32 = arith.addf %29, %31 : vector<32x8xf32>
    %33 = vector.shape_cast %32 : vector<32x8xf32> to vector<2x128xf32>
    %c0_21 = arith.constant 0 : index
    %c0_22 = arith.constant 0 : index
    %34 = vector.load %arg8[%c0_21, %c0_22] : memref<2x128xf32, #tpu.memory_space<vmem>>, vector<2x128xf32>
    tpu.vector_store %arg8[%c0_21, %c0_22], %33 {strides = array<i32>} : memref<2x128xf32, #tpu.memory_space<vmem>>, vector<2x128xf32>,
    return
  }
  func.func @transform_0(%arg0: i32) -> (i32, i32) {
    %c0_i32 = arith.constant 0 : i32
    %c0_i32_0 = arith.constant 0 : i32
    return %arg0, %c0_i32 : i32, i32
  }
  func.func @transform_1(%arg0: i32) -> (i32, i32) {
    %c0_i32 = arith.constant 0 : i32
    %c0_i32_0 = arith.constant 0 : i32
    %c0_i32_1 = arith.constant 0 : i32
    return %c0_i32, %c0_i32_0 : i32, i32
  }
  func.func @transform_2(%arg0: i32) -> (i32, i32) {
    %c0_i32 = arith.constant 0 : i32
    %c0_i32_0 = arith.constant 0 : i32
    %c0_i32_1 = arith.constant 0 : i32
    return %c0_i32, %c0_i32_0 : i32, i32
  }
  func.func @transform_3(%arg0: i32) -> (i32, i32) {
    %c0_i32 = arith.constant 0 : i32
    %c0_i32_0 = arith.constant 0 : i32
    %c0_i32_1 = arith.constant 0 : i32
    return %c0_i32, %c0_i32_0 : i32, i32
  }
  func.func @transform_4(%arg0: i32) -> (i32, i32) {
    %c0_i32 = arith.constant 0 : i32
    %c0_i32_0 = arith.constant 0 : i32
    %c0_i32_1 = arith.constant 0 : i32
    return %c0_i32, %c0_i32_0 : i32, i32
  }
  func.func @transform_5(%arg0: i32) -> (i32, i32) {
    %c0_i32 = arith.constant 0 : i32
    %c0_i32_0 = arith.constant 0 : i32
    %c0_i32_1 = arith.constant 0 : i32
    return %c0_i32, %c0_i32_0 : i32, i32
  }
  func.func @transform_6(%arg0: i32) -> (i32, i32) {
    %c0_i32 = arith.constant 0 : i32
    %c0_i32_0 = arith.constant 0 : i32
    %c0_i32_1 = arith.constant 0 : i32
    return %c0_i32, %c0_i32_0 : i32, i32
  }
  func.func @transform_7(%arg0: i32) -> (i32, i32) {
    %c0_i32 = arith.constant 0 : i32
    %c0_i32_0 = arith.constant 0 : i32
    return %arg0, %c0_i32 : i32, i32
  }
}

module attributes {stable_mosaic.version = 11 : i64} {
  func.func @_mlp_kernel(%arg0: i32, %arg1: memref<32x16xf32, #tpu.memory_space<vmem>>, %arg2: memref<16x32xbf16, #tpu.memory_space<vmem>>, %arg3: memref<1x32xf32, #tpu.memory_space<vmem>>, %arg4: memref<32x32xbf16, #tpu.memory_space<vmem>>, %arg5: memref<1x32xf32, #tpu.memory_space<vmem>>, %arg6: memref<32x8xbf16, #tpu.memory_space<vmem>>, %arg7: memref<1x8xf32, #tpu.memory_space<vmem>>, %arg8: memref<32x8xf32, #tpu.memory_space<vmem>>) attributes {dimension_semantics = [#tpu.dimension_semantics<parallel>], iteration_bounds = array<i64: 1>, scalar_prefetch = 0 : i64, scratch_operands = 0 : i64, tpu.core_type = #tpu.core_type<tc>, window_params = [{transform_indices = @transform_0, window_bounds = array<i64: 32, 16>}, {pipeline_mode = #tpu.pipeline_mode<synchronous>, transform_indices = @transform_1, window_bounds = array<i64: 16, 32>}, {pipeline_mode = #tpu.pipeline_mode<synchronous>, transform_indices = @transform_2, window_bounds = array<i64: 1, 32>}, {pipeline_mode = #tpu.pipeline_mode<synchronous>, transform_indices = @transform_3, window_bounds = array<i64: 32, 32>}, {pipeline_mode = #tpu.pipeline_mode<synchronous>, transform_indices = @transform_4, window_bounds = array<i64: 1, 32>}, {pipeline_mode = #tpu.pipeline_mode<synchronous>, transform_indices = @transform_5, window_bounds = array<i64: 32, 8>}, {pipeline_mode = #tpu.pipeline_mode<synchronous>, transform_indices = @transform_6, window_bounds = array<i64: 1, 8>}, {transform_indices = @transform_7, window_bounds = array<i64: 32, 8>}]} {
    %c0 = arith.constant 0 : index
    %c0_0 = arith.constant 0 : index
    %0 = vector.load %arg1[%c0, %c0_0] : memref<32x16xf32, #tpu.memory_space<vmem>>, vector<32x16xf32>
    %1 = arith.truncf %0 : vector<32x16xf32> to vector<32x16xbf16>
    %c0_1 = arith.constant 0 : index
    %c0_2 = arith.constant 0 : index
    %2 = vector.load %arg2[%c0_1, %c0_2] : memref<16x32xbf16, #tpu.memory_space<vmem>>, vector<16x32xbf16>
    %cst = arith.constant dense<0.000000e+00> : vector<32x32xf32>
    %3 = tpu.matmul %1, %2, %cst {dimension_numbers = #tpu.dot_dimension_numbers<[1], [0], [0], [1], [0, 0, 1, 1], [], []>} : vector<32x16xbf16>, vector<16x32xbf16>, vector<32x32xf32> -> vector<32x32xf32>
    %c0_3 = arith.constant 0 : index
    %c0_4 = arith.constant 0 : index
    %4 = vector.load %arg3[%c0_3, %c0_4] : memref<1x32xf32, #tpu.memory_space<vmem>>, vector<1x32xf32>
    %5 = vector.broadcast %4 : vector<1x32xf32> to vector<32x32xf32>
    %6 = arith.addf %3, %5 : vector<32x32xf32>
    %cst_5 = arith.constant 5.000000e-01 : f32
    %7 = vector.broadcast %cst_5 : f32 to vector<32x32xf32>
    %8 = arith.mulf %7, %6 : vector<32x32xf32>
    %9 = math.tanh %8 : vector<32x32xf32>
    %cst_6 = arith.constant 1.000000e+00 : f32
    %10 = vector.broadcast %cst_6 : f32 to vector<32x32xf32>
    %11 = arith.addf %9, %10 : vector<32x32xf32>
    %cst_7 = arith.constant 5.000000e-01 : f32
    %12 = vector.broadcast %cst_7 : f32 to vector<32x32xf32>
    %13 = arith.mulf %12, %11 : vector<32x32xf32>
    %14 = arith.truncf %13 : vector<32x32xf32> to vector<32x32xbf16>
    %c0_8 = arith.constant 0 : index
    %c0_9 = arith.constant 0 : index
    %15 = vector.load %arg4[%c0_8, %c0_9] : memref<32x32xbf16, #tpu.memory_space<vmem>>, vector<32x32xbf16>
    %cst_10 = arith.constant dense<0.000000e+00> : vector<32x32xf32>
    %16 = tpu.matmul %14, %15, %cst_10 {dimension_numbers = #tpu.dot_dimension_numbers<[1], [0], [0], [1], [0, 0, 1, 1], [], []>} : vector<32x32xbf16>, vector<32x32xbf16>, vector<32x32xf32> -> vector<32x32xf32>
    %c0_11 = arith.constant 0 : index
    %c0_12 = arith.constant 0 : index
    %17 = vector.load %arg5[%c0_11, %c0_12] : memref<1x32xf32, #tpu.memory_space<vmem>>, vector<1x32xf32>
    %18 = vector.broadcast %17 : vector<1x32xf32> to vector<32x32xf32>
    %19 = arith.addf %16, %18 : vector<32x32xf32>
    %cst_13 = arith.constant 5.000000e-01 : f32
    %20 = vector.broadcast %cst_13 : f32 to vector<32x32xf32>
    %21 = arith.mulf %20, %19 : vector<32x32xf32>
    %22 = math.tanh %21 : vector<32x32xf32>
    %cst_14 = arith.constant 1.000000e+00 : f32
    %23 = vector.broadcast %cst_14 : f32 to vector<32x32xf32>
    %24 = arith.addf %22, %23 : vector<32x32xf32>
    %cst_15 = arith.constant 5.000000e-01 : f32
    %25 = vector.broadcast %cst_15 : f32 to vector<32x32xf32>
    %26 = arith.mulf %25, %24 : vector<32x32xf32>
    %27 = arith.truncf %26 : vector<32x32xf32> to vector<32x32xbf16>
    %c0_16 = arith.constant 0 : index
    %c0_17 = arith.constant 0 : index
    %28 = vector.load %arg6[%c0_16, %c0_17] : memref<32x8xbf16, #tpu.memory_space<vmem>>, vector<32x8xbf16>
    %cst_18 = arith.constant dense<0.000000e+00> : vector<32x8xf32>
    %29 = tpu.matmul %27, %28, %cst_18 {dimension_numbers = #tpu.dot_dimension_numbers<[1], [0], [0], [1], [0, 0, 1, 1], [], []>} : vector<32x32xbf16>, vector<32x8xbf16>, vector<32x8xf32> -> vector<32x8xf32>
    %c0_19 = arith.constant 0 : index
    %c0_20 = arith.constant 0 : index
    %30 = vector.load %arg7[%c0_19, %c0_20] : memref<1x8xf32, #tpu.memory_space<vmem>>, vector<1x8xf32>
    %31 = vector.broadcast %30 : vector<1x8xf32> to vector<32x8xf32>
    %32 = arith.addf %29, %31 : vector<32x8xf32>
    %c0_21 = arith.constant 0 : index
    %c0_22 = arith.constant 0 : index
    %33 = vector.load %arg8[%c0_21, %c0_22] : memref<32x8xf32, #tpu.memory_space<vmem>>, vector<32x8xf32>
    tpu.vector_store %arg8[%c0_21, %c0_22], %32 {strides = array<i32>} : memref<32x8xf32, #tpu.memory_space<vmem>>, vector<32x8xf32>,
    return
  }
  func.func @transform_0(%arg0: i32) -> (i32, i32) {
    %c0_i32 = arith.constant 0 : i32
    %c0_i32_0 = arith.constant 0 : i32
    return %arg0, %c0_i32 : i32, i32
  }
  func.func @transform_1(%arg0: i32) -> (i32, i32) {
    %c0_i32 = arith.constant 0 : i32
    %c0_i32_0 = arith.constant 0 : i32
    %c0_i32_1 = arith.constant 0 : i32
    return %c0_i32, %c0_i32_0 : i32, i32
  }
  func.func @transform_2(%arg0: i32) -> (i32, i32) {
    %c0_i32 = arith.constant 0 : i32
    %c0_i32_0 = arith.constant 0 : i32
    %c0_i32_1 = arith.constant 0 : i32
    return %c0_i32, %c0_i32_0 : i32, i32
  }
  func.func @transform_3(%arg0: i32) -> (i32, i32) {
    %c0_i32 = arith.constant 0 : i32
    %c0_i32_0 = arith.constant 0 : i32
    %c0_i32_1 = arith.constant 0 : i32
    return %c0_i32, %c0_i32_0 : i32, i32
  }
  func.func @transform_4(%arg0: i32) -> (i32, i32) {
    %c0_i32 = arith.constant 0 : i32
    %c0_i32_0 = arith.constant 0 : i32
    %c0_i32_1 = arith.constant 0 : i32
    return %c0_i32, %c0_i32_0 : i32, i32
  }
  func.func @transform_5(%arg0: i32) -> (i32, i32) {
    %c0_i32 = arith.constant 0 : i32
    %c0_i32_0 = arith.constant 0 : i32
    %c0_i32_1 = arith.constant 0 : i32
    return %c0_i32, %c0_i32_0 : i32, i32
  }
  func.func @transform_6(%arg0: i32) -> (i32, i32) {
    %c0_i32 = arith.constant 0 : i32
    %c0_i32_0 = arith.constant 0 : i32
    %c0_i32_1 = arith.constant 0 : i32
    return %c0_i32, %c0_i32_0 : i32, i32
  }
  func.func @transform_7(%arg0: i32) -> (i32, i32) {
    %c0_i32 = arith.constant 0 : i32
    %c0_i32_0 = arith.constant 0 : i32
    return %arg0, %c0_i32 : i32, i32
  }
}

module attributes {stable_mosaic.version = 11 : i64} {
  func.func @_mlp_kernel(%arg0: i32, %arg1: memref<32x16xf32, #tpu.memory_space<vmem>>, %arg2: memref<16x32xbf16, #tpu.memory_space<vmem>>, %arg3: memref<1x32xf32, #tpu.memory_space<vmem>>, %arg4: memref<32x32xbf16, #tpu.memory_space<vmem>>, %arg5: memref<1x32xf32, #tpu.memory_space<vmem>>, %arg6: memref<32x8xbf16, #tpu.memory_space<vmem>>, %arg7: memref<1x8xf32, #tpu.memory_space<vmem>>, %arg8: memref<32x8xf32, #tpu.memory_space<vmem>>) attributes {dimension_semantics = [#tpu.dimension_semantics<parallel>], iteration_bounds = array<i64: 1>, scalar_prefetch = 0 : i64, scratch_operands = 0 : i64, tpu.core_type = #tpu.core_type<tc>, window_params = [{transform_indices = @transform_0, window_bounds = array<i64: 32, 16>}, {pipeline_mode = #tpu.pipeline_mode<synchronous>, transform_indices = @transform_1, window_bounds = array<i64: 16, 32>}, {pipeline_mode = #tpu.pipeline_mode<synchronous>, transform_indices = @transform_2, window_bounds = array<i64: 1, 32>}, {pipeline_mode = #tpu.pipeline_mode<synchronous>, transform_indices = @transform_3, window_bounds = array<i64: 32, 32>}, {pipeline_mode = #tpu.pipeline_mode<synchronous>, transform_indices = @transform_4, window_bounds = array<i64: 1, 32>}, {pipeline_mode = #tpu.pipeline_mode<synchronous>, transform_indices = @transform_5, window_bounds = array<i64: 32, 8>}, {pipeline_mode = #tpu.pipeline_mode<synchronous>, transform_indices = @transform_6, window_bounds = array<i64: 1, 8>}, {transform_indices = @transform_7, window_bounds = array<i64: 32, 8>}]} {
    %c0 = arith.constant 0 : index
    %c0_0 = arith.constant 0 : index
    %0 = vector.load %arg1[%c0, %c0_0] : memref<32x16xf32, #tpu.memory_space<vmem>>, vector<32x16xf32>
    %1 = arith.truncf %0 : vector<32x16xf32> to vector<32x16xbf16>
    %c0_1 = arith.constant 0 : index
    %c0_2 = arith.constant 0 : index
    %2 = vector.load %arg2[%c0_1, %c0_2] : memref<16x32xbf16, #tpu.memory_space<vmem>>, vector<16x32xbf16>
    %cst = arith.constant dense<0.000000e+00> : vector<32x32xf32>
    %3 = tpu.matmul %1, %2, %cst {dimension_numbers = #tpu.dot_dimension_numbers<[1], [0], [0], [1], [0, 0, 1, 1], [], []>} : vector<32x16xbf16>, vector<16x32xbf16>, vector<32x32xf32> -> vector<32x32xf32>
    %c0_3 = arith.constant 0 : index
    %c0_4 = arith.constant 0 : index
    %4 = vector.load %arg3[%c0_3, %c0_4] : memref<1x32xf32, #tpu.memory_space<vmem>>, vector<1x32xf32>
    %5 = vector.broadcast %4 : vector<1x32xf32> to vector<32x32xf32>
    %6 = arith.addf %3, %5 : vector<32x32xf32>
    %cst_5 = arith.constant 5.000000e-01 : f32
    %7 = vector.broadcast %cst_5 : f32 to vector<32x32xf32>
    %8 = arith.mulf %7, %6 : vector<32x32xf32>
    %9 = math.tanh %8 : vector<32x32xf32>
    %cst_6 = arith.constant 1.000000e+00 : f32
    %10 = vector.broadcast %cst_6 : f32 to vector<32x32xf32>
    %11 = arith.addf %9, %10 : vector<32x32xf32>
    %cst_7 = arith.constant 5.000000e-01 : f32
    %12 = vector.broadcast %cst_7 : f32 to vector<32x32xf32>
    %13 = arith.mulf %12, %11 : vector<32x32xf32>
    %14 = arith.truncf %13 : vector<32x32xf32> to vector<32x32xbf16>
    %c0_8 = arith.constant 0 : index
    %c0_9 = arith.constant 0 : index
    %15 = vector.load %arg4[%c0_8, %c0_9] : memref<32x32xbf16, #tpu.memory_space<vmem>>, vector<32x32xbf16>
    %cst_10 = arith.constant dense<0.000000e+00> : vector<32x32xf32>
    %16 = tpu.matmul %14, %15, %cst_10 {dimension_numbers = #tpu.dot_dimension_numbers<[1], [0], [0], [1], [0, 0, 1, 1], [], []>} : vector<32x32xbf16>, vector<32x32xbf16>, vector<32x32xf32> -> vector<32x32xf32>
    %c0_11 = arith.constant 0 : index
    %c0_12 = arith.constant 0 : index
    %17 = vector.load %arg5[%c0_11, %c0_12] : memref<1x32xf32, #tpu.memory_space<vmem>>, vector<1x32xf32>
    %18 = vector.broadcast %17 : vector<1x32xf32> to vector<32x32xf32>
    %19 = arith.addf %16, %18 : vector<32x32xf32>
    %cst_13 = arith.constant 5.000000e-01 : f32
    %20 = vector.broadcast %cst_13 : f32 to vector<32x32xf32>
    %21 = arith.mulf %20, %19 : vector<32x32xf32>
    %22 = math.tanh %21 : vector<32x32xf32>
    %cst_14 = arith.constant 1.000000e+00 : f32
    %23 = vector.broadcast %cst_14 : f32 to vector<32x32xf32>
    %24 = arith.addf %22, %23 : vector<32x32xf32>
    %cst_15 = arith.constant 5.000000e-01 : f32
    %25 = vector.broadcast %cst_15 : f32 to vector<32x32xf32>
    %26 = arith.mulf %25, %24 : vector<32x32xf32>
    %27 = arith.truncf %26 : vector<32x32xf32> to vector<32x32xbf16>
    %c0_16 = arith.constant 0 : index
    %c0_17 = arith.constant 0 : index
    %28 = vector.load %arg6[%c0_16, %c0_17] : memref<32x8xbf16, #tpu.memory_space<vmem>>, vector<32x8xbf16>
    %cst_18 = arith.constant dense<0.000000e+00> : vector<32x8xf32>
    %29 = tpu.matmul %27, %28, %cst_18 {dimension_numbers = #tpu.dot_dimension_numbers<[1], [0], [0], [1], [0, 0, 1, 1], [], []>} : vector<32x32xbf16>, vector<32x8xbf16>, vector<32x8xf32> -> vector<32x8xf32>
    %c0_19 = arith.constant 0 : index
    %c0_20 = arith.constant 0 : index
    %30 = vector.load %arg7[%c0_19, %c0_20] : memref<1x8xf32, #tpu.memory_space<vmem>>, vector<1x8xf32>
    %31 = vector.broadcast %30 : vector<1x8xf32> to vector<32x8xf32>
    %32 = arith.addf %29, %31 : vector<32x8xf32>
    %c0_21 = arith.constant 0 : index
    %c0_22 = arith.constant 0 : index
    %33 = vector.load %arg8[%c0_21, %c0_22] : memref<32x8xf32, #tpu.memory_space<vmem>>, vector<32x8xf32>
    tpu.vector_store %arg8[%c0_21, %c0_22], %32 {strides = array<i32>} : memref<32x8xf32, #tpu.memory_space<vmem>>, vector<32x8xf32>,
    return
  }
  func.func @transform_0(%arg0: i32) -> (i32, i32) {
    %c0_i32 = arith.constant 0 : i32
    %c0_i32_0 = arith.constant 0 : i32
    return %arg0, %c0_i32 : i32, i32
  }
  func.func @transform_1(%arg0: i32) -> (i32, i32) {
    %c0_i32 = arith.constant 0 : i32
    %c0_i32_0 = arith.constant 0 : i32
    %c0_i32_1 = arith.constant 0 : i32
    return %c0_i32, %c0_i32_0 : i32, i32
  }
  func.func @transform_2(%arg0: i32) -> (i32, i32) {
    %c0_i32 = arith.constant 0 : i32
    %c0_i32_0 = arith.constant 0 : i32
    %c0_i32_1 = arith.constant 0 : i32
    return %c0_i32, %c0_i32_0 : i32, i32
  }
  func.func @transform_3(%arg0: i32) -> (i32, i32) {
    %c0_i32 = arith.constant 0 : i32
    %c0_i32_0 = arith.constant 0 : i32
    %c0_i32_1 = arith.constant 0 : i32
    return %c0_i32, %c0_i32_0 : i32, i32
  }
  func.func @transform_4(%arg0: i32) -> (i32, i32) {
    %c0_i32 = arith.constant 0 : i32
    %c0_i32_0 = arith.constant 0 : i32
    %c0_i32_1 = arith.constant 0 : i32
    return %c0_i32, %c0_i32_0 : i32, i32
  }
  func.func @transform_5(%arg0: i32) -> (i32, i32) {
    %c0_i32 = arith.constant 0 : i32
    %c0_i32_0 = arith.constant 0 : i32
    %c0_i32_1 = arith.constant 0 : i32
    return %c0_i32, %c0_i32_0 : i32, i32
  }
  func.func @transform_6(%arg0: i32) -> (i32, i32) {
    %c0_i32 = arith.constant 0 : i32
    %c0_i32_0 = arith.constant 0 : i32
    %c0_i32_1 = arith.constant 0 : i32
    return %c0_i32, %c0_i32_0 : i32, i32
  }
  func.func @transform_7(%arg0: i32) -> (i32, i32) {
    %c0_i32 = arith.constant 0 : i32
    %c0_i32_0 = arith.constant 0 : i32
    return %arg0, %c0_i32 : i32, i32
  }
}

</mosaic_0001>

<bundles_post_ra>
// kernel: _forward.1
= control target key start
LH: loop header
LB: loop body
LE: loop exit
PB: predicated region body
PF: predicated region fallthrough
CT: control target
= control target key end

     0   :  { %vm48_vm0 = vcmask 130048   ;;  %vm145_vm1 = vcmask 261120   ;;  %vm297_vm2 = vcmask 64512   ;;  %s466_s1 = inlined_call_operand.vmem [shape: bf16[16,32], index: 1, kind: input, shape index: {}]   ;;  %s467_s0 = inlined_call_operand.vmem [shape: f32[30,16], index: 0, kind: input, shape index: {}]   ;;  %s468_s3 = inlined_call_operand.vmem [shape: bf16[32,32], index: 3, kind: input, shape index: {}]   ;;  %s469_s2 = inlined_call_operand.vmem [shape: f32[1,32], index: 2, kind: input, shape index: {}]   ;;  %s470_s5 = inlined_call_operand.vmem [shape: bf16[32,8], index: 5, kind: input, shape index: {}]   ;;  %s471_s4 = inlined_call_operand.vmem [shape: f32[1,32], index: 4, kind: input, shape index: {}]   ;;  %s472_s6 = inlined_call_operand.vmem [shape: f32[1,8], index: 6, kind: input, shape index: {}]   ;;  %s473_s7 = inlined_call_operand.vmem [shape: f32[30,8], index: 7, kind: output, shape index: {}]  }
   0x1   :  { %v353_v0 = vld [vmem:[%s466_s1] sm:$0xff]   ;;  %v28_v2 = vld [vmem:[%s467_s0 + $0x8] sm:$0xff]  ;;  %v29_v3 = vld [vmem:[%s467_s0 + $0x10] sm:$0xff] }
   0x2   :  { %v27_v1 = vld [vmem:[%s467_s0] sm:$0xff]  ;;  %331 = vmatprep.subr.bf16.mxu0 %v353_v0  ;;  %v30_v5 = vld [vmem:[%s467_s0 + $0x18] sm:$0xff]  ;;  %v354_v7 = vld [vmem:[%s468_s3 + $0x8] sm:$0xff]  }
   0x3   :  { %v31_v4 = vpack.c.bf16 %v28_v2, %v27_v1  ;;  %332 = vmatpush3.bf16.msra.mxu0 %v353_v0  ;;  %v32_v6 = vpack.c.bf16 %v30_v5, %v29_v3  ;;  %337 = vmatprep.subr.bf16.mxu1 %v354_v7  ;;  %v355_v8 = vld [vmem:[%s468_s3] sm:$0xff]   ;;  %v356_v36 = vld [vmem:[%s470_s5 + $0x8] sm:$0xff]  }
   0x4   :  { %338 = vmatpush3.bf16.msra.mxu1 %v354_v7  ;;  %v306_v9 = vld [vmem:[%s469_s2] ss:$0 sm:$0xff]  ;;  %345 = vmatprep.subr.bf16.mxu0 %v356_v36 }
   0x5   :  { %333 = vmatprep.mubr.msk.bf16.mxu0 %vm48_vm0, %v31_v4  ;;  %339 = vmatprep.subr.bf16.mxu1 %v355_v8  ;;  %v357_v37 = vld [vmem:[%s470_s5] sm:$0xff]  }
   0x6   :  { %334 = vmatmul.mubr.msk.bf16.vlgmr.msra.gmra.mxu0 %vm48_vm0, %v32_v6  ;;  %v310_v38 = vld [vmem:[%s471_s4] ss:$0 sm:$0xff] }
   0x7   :  { %346 = vmatpush3.bf16.msra.mxu0 %v356_v36  ;;  %v315_v1 = vld [vmem:[%s472_s6] ss:$0 sm:$0xff] }
   0x8   :  { %340 = vmatpush3.bf16.msra.mxu1 %v355_v8  ;;  %347 = vmatprep.subr.bf16.mxu0 %v357_v37 }
   0xb   :  { %348 = vmatpush3.bf16.msra.mxu0 %v357_v37 }
  0xc6   :  { %v335_v10 = vpop.f32.mrf.mxu0 }
  0xc7   :  { %v98_v11 = vadd.f32 %v335_v10, %v306_v9 }
  0xc8   :  { %v89_v12 = vpop.f32.mrf.mxu0 }
  0xc9   :  { %v90_v13 = vadd.f32 %v306_v9, %v89_v12  ;;  %v106_v14 = vmul.f32 0.5, %v98_v11 }
  0xca   :  { %v336_v15 = vpop.f32.mrf.mxu0 }
  0xcb   :  { %v104_v16 = vmul.f32 0.5, %v90_v13  ;;  %v101_v17 = vadd.f32 %v336_v15, %v306_v9 }
  0xcc   :  { %v92_v18 = vpop.f32.mrf.mxu0 }
  0xcd   :  { %358 = vtanh.f32 %v104_v16  ;;  %v107_v19 = vmul.f32 0.5, %v101_v17  ;;  %v93_v20 = vadd.f32 %v306_v9, %v92_v18 }
  0xce   :  { %360 = vtanh.f32 %v106_v14 }
  0xcf   :  { %362 = vtanh.f32 %v107_v19  ;;  %v105_v21 = vmul.f32 0.5, %v93_v20 }
  0xd1   :  { %364 = vtanh.f32 %v105_v21 }
  0xda   :  { %v359_v22 = vpop.eup %358 }
  0xdb   :  { %v361_v23 = vpop.eup %360  ;;  %v112_v26 = vadd.f32 1.0, %v359_v22 }
  0xdc   :  { %v363_v24 = vpop.eup %362  ;;  %v114_v28 = vadd.f32 1.0, %v361_v23 }
  0xdd   :  { %v115_v25 = vadd.f32 1.0, %v363_v24  ;;  %v116_v31 = vmul.f32 0.5, %v112_v26 }
  0xde   :  { %v365_v27 = vpop.eup %364  ;;  %v118_v33 = vmul.f32 0.5, %v114_v28 }
  0xdf   :  { %v113_v29 = vadd.f32 1.0, %v365_v27  ;;  %v119_v30 = vmul.f32 0.5, %v115_v25 }
  0xe1   :  { %v117_v32 = vmul.f32 0.5, %v113_v29  ;;  %v121_v35 = vpack.c.bf16 %v119_v30, %v118_v33 }
  0xe3   :  { %v120_v34 = vpack.c.bf16 %v117_v32, %v116_v31 }
  0xe5   :  { %341 = vmatprep.mubr.msk.bf16.mxu1 %vm145_vm1, %v120_v34 }
  0xe6   :  { %342 = vmatmul.mubr.msk.bf16.vlgmr.msra.gmra.mxu1 %vm145_vm1, %v121_v35 }
 0x1a6   :  { %v343_v39 = vpop.f32.mrf.mxu1 }
 0x1a7   :  { %v195_v40 = vadd.f32 %v343_v39, %v310_v38 }
 0x1a8   :  { %v186_v41 = vpop.f32.mrf.mxu1 }
 0x1a9   :  { %v187_v42 = vadd.f32 %v310_v38, %v186_v41  ;;  %v203_v43 = vmul.f32 0.5, %v195_v40 }
 0x1aa   :  { %v344_v44 = vpop.f32.mrf.mxu1 }
 0x1ab   :  { %v201_v45 = vmul.f32 0.5, %v187_v42  ;;  %v198_v46 = vadd.f32 %v344_v44, %v310_v38 }
 0x1ac   :  { %v189_v47 = vpop.f32.mrf.mxu1 }
 0x1ad   :  { %366 = vtanh.f32 %v201_v45  ;;  %v204_v48 = vmul.f32 0.5, %v198_v46  ;;  %v190_v49 = vadd.f32 %v310_v38, %v189_v47 }
 0x1ae   :  { %368 = vtanh.f32 %v203_v43 }
 0x1af   :  { %370 = vtanh.f32 %v204_v48  ;;  %v202_v50 = vmul.f32 0.5, %v190_v49 }
 0x1b1   :  { %372 = vtanh.f32 %v202_v50 }
 0x1ba   :  { %v367_v51 = vpop.eup %366 }
 0x1bb   :  { %v369_v52 = vpop.eup %368  ;;  %v209_v54 = vadd.f32 1.0, %v367_v51 }
 0x1bc   :  { %v371_v53 = vpop.eup %370  ;;  %v211_v57 = vadd.f32 1.0, %v369_v52 }
 0x1bd   :  { %v212_v55 = vadd.f32 1.0, %v371_v53  ;;  %v213_v60 = vmul.f32 0.5, %v209_v54 }
 0x1be   :  { %v373_v56 = vpop.eup %372  ;;  %v215_v62 = vmul.f32 0.5, %v211_v57 }
 0x1bf   :  { %v210_v58 = vadd.f32 1.0, %v373_v56  ;;  %v216_v59 = vmul.f32 0.5, %v212_v55 }
 0x1c1   :  { %v214_v61 = vmul.f32 0.5, %v210_v58  ;;  %v218_v0 = vpack.c.bf16 %v216_v59, %v215_v62 }
 0x1c3   :  { %v217_v63 = vpack.c.bf16 %v214_v61, %v213_v60 }
 0x1c5   :  { %349 = vmatprep.mubr.msk.bf16.mxu0 %vm145_vm1, %v217_v63 }
 0x1c6   :  { %350 = vmatmul.mubr.msk.bf16.vlgmr.msra.gmra.mxu0 %vm145_vm1, %v218_v0 }
 0x286   :  { %v351_v2 = vpop.f32.mrf.mxu0 }
 0x287   :  { %v291_v3 = vadd.f32 %v351_v2, %v315_v1 }
 0x288   :  { %v282_v4 = vpop.f32.mrf.mxu0 }
 0x289   :  { %300 = vst.msk [vmem:[%s473_s7 + $0x10] sm:$0xff] %vm297_vm2, %v291_v3  ;;  %v283_v5 = vadd.f32 %v315_v1, %v282_v4 }
 0x28a   :  { %v352_v6 = vpop.f32.mrf.mxu0 }
 0x28b   :  { %298 = vst.msk [vmem:[%s473_s7] sm:$0xff] %vm297_vm2, %v283_v5  ;;  %v294_v7 = vadd.f32 %v352_v6, %v315_v1 }
 0x28c   :  { %v285_v8 = vpop.f32.mrf.mxu0 }
 0x28d   :  { %301 = vst.msk [vmem:[%s473_s7 + $0x18] sm:$0xff] %vm297_vm2, %v294_v7  ;;  %v286_v9 = vadd.f32 %v315_v1, %v285_v8 }
 0x28f   :  { %299 = vst.msk [vmem:[%s473_s7 + $0x8] sm:$0xff] %vm297_vm2, %v286_v9 }

// kernel: _forward.1
= control target key start
LH: loop header
LB: loop body
LE: loop exit
PB: predicated region body
PF: predicated region fallthrough
CT: control target
= control target key end

     0   :  { %vm48_vm0 = vcmask 130048   ;;  %vm145_vm1 = vcmask 261120   ;;  %vm297_vm2 = vcmask 64512   ;;  %s466_s1 = inlined_call_operand.vmem [shape: bf16[16,32], index: 1, kind: input, shape index: {}]   ;;  %s467_s0 = inlined_call_operand.vmem [shape: f32[30,16], index: 0, kind: input, shape index: {}]   ;;  %s468_s3 = inlined_call_operand.vmem [shape: bf16[32,32], index: 3, kind: input, shape index: {}]   ;;  %s469_s2 = inlined_call_operand.vmem [shape: f32[1,32], index: 2, kind: input, shape index: {}]   ;;  %s470_s5 = inlined_call_operand.vmem [shape: bf16[32,8], index: 5, kind: input, shape index: {}]   ;;  %s471_s4 = inlined_call_operand.vmem [shape: f32[1,32], index: 4, kind: input, shape index: {}]   ;;  %s472_s6 = inlined_call_operand.vmem [shape: f32[1,8], index: 6, kind: input, shape index: {}]   ;;  %s473_s7 = inlined_call_operand.vmem [shape: f32[30,8], index: 7, kind: output, shape index: {}]  }
   0x1   :  { %v353_v0 = vld [vmem:[%s466_s1] sm:$0xff]   ;;  %v28_v2 = vld [vmem:[%s467_s0 + $0x8] sm:$0xff]  ;;  %v29_v3 = vld [vmem:[%s467_s0 + $0x10] sm:$0xff] }
   0x2   :  { %v27_v1 = vld [vmem:[%s467_s0] sm:$0xff]  ;;  %331 = vmatprep.subr.bf16.mxu0 %v353_v0  ;;  %v30_v5 = vld [vmem:[%s467_s0 + $0x18] sm:$0xff]  ;;  %v354_v7 = vld [vmem:[%s468_s3 + $0x8] sm:$0xff]  }
   0x3   :  { %v31_v4 = vpack.c.bf16 %v28_v2, %v27_v1  ;;  %332 = vmatpush3.bf16.msra.mxu0 %v353_v0  ;;  %v32_v6 = vpack.c.bf16 %v30_v5, %v29_v3  ;;  %337 = vmatprep.subr.bf16.mxu1 %v354_v7  ;;  %v355_v8 = vld [vmem:[%s468_s3] sm:$0xff]   ;;  %v356_v36 = vld [vmem:[%s470_s5 + $0x8] sm:$0xff]  }
   0x4   :  { %338 = vmatpush3.bf16.msra.mxu1 %v354_v7  ;;  %v306_v9 = vld [vmem:[%s469_s2] ss:$0 sm:$0xff]  ;;  %345 = vmatprep.subr.bf16.mxu0 %v356_v36 }
   0x5   :  { %333 = vmatprep.mubr.msk.bf16.mxu0 %vm48_vm0, %v31_v4  ;;  %339 = vmatprep.subr.bf16.mxu1 %v355_v8  ;;  %v357_v37 = vld [vmem:[%s470_s5] sm:$0xff]  }
   0x6   :  { %334 = vmatmul.mubr.msk.bf16.vlgmr.msra.gmra.mxu0 %vm48_vm0, %v32_v6  ;;  %v310_v38 = vld [vmem:[%s471_s4] ss:$0 sm:$0xff] }
   0x7   :  { %346 = vmatpush3.bf16.msra.mxu0 %v356_v36  ;;  %v315_v1 = vld [vmem:[%s472_s6] ss:$0 sm:$0xff] }
   0x8   :  { %340 = vmatpush3.bf16.msra.mxu1 %v355_v8  ;;  %347 = vmatprep.subr.bf16.mxu0 %v357_v37 }
   0xb   :  { %348 = vmatpush3.bf16.msra.mxu0 %v357_v37 }
  0xc6   :  { %v335_v10 = vpop.f32.mrf.mxu0 }
  0xc7   :  { %v98_v11 = vadd.f32 %v335_v10, %v306_v9 }
  0xc8   :  { %v89_v12 = vpop.f32.mrf.mxu0 }
  0xc9   :  { %v90_v13 = vadd.f32 %v306_v9, %v89_v12  ;;  %v106_v14 = vmul.f32 0.5, %v98_v11 }
  0xca   :  { %v336_v15 = vpop.f32.mrf.mxu0 }
  0xcb   :  { %v104_v16 = vmul.f32 0.5, %v90_v13  ;;  %v101_v17 = vadd.f32 %v336_v15, %v306_v9 }
  0xcc   :  { %v92_v18 = vpop.f32.mrf.mxu0 }
  0xcd   :  { %358 = vtanh.f32 %v104_v16  ;;  %v107_v19 = vmul.f32 0.5, %v101_v17  ;;  %v93_v20 = vadd.f32 %v306_v9, %v92_v18 }
  0xce   :  { %360 = vtanh.f32 %v106_v14 }
  0xcf   :  { %362 = vtanh.f32 %v107_v19  ;;  %v105_v21 = vmul.f32 0.5, %v93_v20 }
  0xd1   :  { %364 = vtanh.f32 %v105_v21 }
  0xda   :  { %v359_v22 = vpop.eup %358 }
  0xdb   :  { %v361_v23 = vpop.eup %360  ;;  %v112_v26 = vadd.f32 1.0, %v359_v22 }
  0xdc   :  { %v363_v24 = vpop.eup %362  ;;  %v114_v28 = vadd.f32 1.0, %v361_v23 }
  0xdd   :  { %v115_v25 = vadd.f32 1.0, %v363_v24  ;;  %v116_v31 = vmul.f32 0.5, %v112_v26 }
  0xde   :  { %v365_v27 = vpop.eup %364  ;;  %v118_v33 = vmul.f32 0.5, %v114_v28 }
  0xdf   :  { %v113_v29 = vadd.f32 1.0, %v365_v27  ;;  %v119_v30 = vmul.f32 0.5, %v115_v25 }
  0xe1   :  { %v117_v32 = vmul.f32 0.5, %v113_v29  ;;  %v121_v35 = vpack.c.bf16 %v119_v30, %v118_v33 }
  0xe3   :  { %v120_v34 = vpack.c.bf16 %v117_v32, %v116_v31 }
  0xe5   :  { %341 = vmatprep.mubr.msk.bf16.mxu1 %vm145_vm1, %v120_v34 }
  0xe6   :  { %342 = vmatmul.mubr.msk.bf16.vlgmr.msra.gmra.mxu1 %vm145_vm1, %v121_v35 }
 0x1a6   :  { %v343_v39 = vpop.f32.mrf.mxu1 }
 0x1a7   :  { %v195_v40 = vadd.f32 %v343_v39, %v310_v38 }
 0x1a8   :  { %v186_v41 = vpop.f32.mrf.mxu1 }
 0x1a9   :  { %v187_v42 = vadd.f32 %v310_v38, %v186_v41  ;;  %v203_v43 = vmul.f32 0.5, %v195_v40 }
 0x1aa   :  { %v344_v44 = vpop.f32.mrf.mxu1 }
 0x1ab   :  { %v201_v45 = vmul.f32 0.5, %v187_v42  ;;  %v198_v46 = vadd.f32 %v344_v44, %v310_v38 }
 0x1ac   :  { %v189_v47 = vpop.f32.mrf.mxu1 }
 0x1ad   :  { %366 = vtanh.f32 %v201_v45  ;;  %v204_v48 = vmul.f32 0.5, %v198_v46  ;;  %v190_v49 = vadd.f32 %v310_v38, %v189_v47 }
 0x1ae   :  { %368 = vtanh.f32 %v203_v43 }
 0x1af   :  { %370 = vtanh.f32 %v204_v48  ;;  %v202_v50 = vmul.f32 0.5, %v190_v49 }
 0x1b1   :  { %372 = vtanh.f32 %v202_v50 }
 0x1ba   :  { %v367_v51 = vpop.eup %366 }
 0x1bb   :  { %v369_v52 = vpop.eup %368  ;;  %v209_v54 = vadd.f32 1.0, %v367_v51 }
 0x1bc   :  { %v371_v53 = vpop.eup %370  ;;  %v211_v57 = vadd.f32 1.0, %v369_v52 }
 0x1bd   :  { %v212_v55 = vadd.f32 1.0, %v371_v53  ;;  %v213_v60 = vmul.f32 0.5, %v209_v54 }
 0x1be   :  { %v373_v56 = vpop.eup %372  ;;  %v215_v62 = vmul.f32 0.5, %v211_v57 }
 0x1bf   :  { %v210_v58 = vadd.f32 1.0, %v373_v56  ;;  %v216_v59 = vmul.f32 0.5, %v212_v55 }
 0x1c1   :  { %v214_v61 = vmul.f32 0.5, %v210_v58  ;;  %v218_v0 = vpack.c.bf16 %v216_v59, %v215_v62 }
 0x1c3   :  { %v217_v63 = vpack.c.bf16 %v214_v61, %v213_v60 }
 0x1c5   :  { %349 = vmatprep.mubr.msk.bf16.mxu0 %vm145_vm1, %v217_v63 }
 0x1c6   :  { %350 = vmatmul.mubr.msk.bf16.vlgmr.msra.gmra.mxu0 %vm145_vm1, %v218_v0 }
 0x286   :  { %v351_v2 = vpop.f32.mrf.mxu0 }
 0x287   :  { %v291_v3 = vadd.f32 %v351_v2, %v315_v1 }
 0x288   :  { %v282_v4 = vpop.f32.mrf.mxu0 }
 0x289   :  { %300 = vst.msk [vmem:[%s473_s7 + $0x10] sm:$0xff] %vm297_vm2, %v291_v3  ;;  %v283_v5 = vadd.f32 %v315_v1, %v282_v4 }
 0x28a   :  { %v352_v6 = vpop.f32.mrf.mxu0 }
 0x28b   :  { %298 = vst.msk [vmem:[%s473_s7] sm:$0xff] %vm297_vm2, %v283_v5  ;;  %v294_v7 = vadd.f32 %v352_v6, %v315_v1 }
 0x28c   :  { %v285_v8 = vpop.f32.mrf.mxu0 }
 0x28d   :  { %301 = vst.msk [vmem:[%s473_s7 + $0x18] sm:$0xff] %vm297_vm2, %v294_v7  ;;  %v286_v9 = vadd.f32 %v315_v1, %v285_v8 }
 0x28f   :  { %299 = vst.msk [vmem:[%s473_s7 + $0x8] sm:$0xff] %vm297_vm2, %v286_v9 }

</bundles_post_ra>
